<compile_context>
chip_gen: v5e
topology: v5e:2x2
jax: 0.10.0
libtpu: 0.0.40
codegen_flags: <defaults>
</compile_context>

<pallas_src>
import functools

import jax
import jax.numpy as jnp
from jax.experimental import pallas as pl
from jax.experimental.pallas import tpu as pltpu

LANE = 128
SUBLANE = 8
LN_EPS = 1e-5
VMEM_LIMIT = 32 << 20          # scoped-VMEM request (safe on v5e/v6e/v7x)
WEIGHT_GROUP_BUDGET = 12 << 20  # max resident weights per fused call
TILE_BUDGET = 24 << 20          # weights + double-buffered activation tiles


def _round_up(x, m):
    return ((x + m - 1) // m) * m


def _pad2d(a, rows, cols):
    r, c = a.shape
    return jnp.pad(a, ((0, rows - r), (0, cols - c)))


def _tile_rows(rows, per_row_f32, weight_bytes, max_tb=256, budget_bytes=TILE_BUDGET):
    """Largest multiple of 8 (<= max_tb) keeping double-buffered activation tiles
    plus the resident weights under the VMEM budget."""
    tb = min(max_tb, _round_up(rows, SUBLANE))
    while tb > SUBLANE and tb * per_row_f32 * 4 + weight_bytes > budget_bytes:
        tb -= SUBLANE
    return tb


# --------------------------------------------------------------------------
# Kernels
# --------------------------------------------------------------------------
def _residual_multi_kernel(*refs, n_blocks, hid_pads, out_trues, layer_norm):
    """n_blocks sequential ResidualBlocks (heterogeneous sizes) fused in one
    kernel: refs = [x, (wcat, bcat, wp, bp, gamma, beta) * n_blocks, out]."""
    x_ref = refs[0]
    out_ref = refs[-1]
    z = x_ref[...]
    for blk in range(n_blocks):  # static unroll; n_blocks is small
        wcat_ref, bcat_ref, wp_ref, bp_ref, gamma_ref, beta_ref = (
            refs[1 + 6 * blk: 7 + 6 * blk])
        # One fused MXU pass for both x-consuming matmuls: W = [Wh | Wr].
        xw = jnp.dot(z, wcat_ref[...], preferred_element_type=jnp.float32) + bcat_ref[...]
        hp = hid_pads[blk]
        h = jnp.maximum(xw[:, :hp], 0.0)
        residual = xw[:, hp:]
        y = jnp.dot(h, wp_ref[...], preferred_element_type=jnp.float32) + bp_ref[...]
        # TODO(synk): nn.Dropout is identity in eval mode; training-mode mask not implemented.
        z = y + residual
        if layer_norm:
            # Padded feature columns of z are exactly zero, so sums over the
            # padded width equal sums over the true width; gamma/beta pad to 0,
            # so the padded columns stay zero for the next chained block.
            inv_n = 1.0 / out_trues[blk]
            s1 = jnp.sum(z, axis=-1, keepdims=True)
            s2 = jnp.sum(z * z, axis=-1, keepdims=True)
            mean = s1 * inv_n
            var = jnp.maximum(s2 * inv_n - mean * mean, 0.0)
            z = (z - mean) * jax.lax.rsqrt(var + LN_EPS) * gamma_ref[...] + beta_ref[...]
    out_ref[...] = z.astype(out_ref.dtype)


def _linear_add_kernel(x_ref, w_ref, b_ref, add_ref, out_ref):
    y = jnp.dot(x_ref[...], w_ref[...], preferred_element_type=jnp.float32)
    out_ref[...] = (y + b_ref[...] + add_ref[...]).astype(out_ref.dtype)


# --------------------------------------------------------------------------
# Pallas wrappers
# --------------------------------------------------------------------------
def _block_weight_bytes(p):
    in_t, hid_t = p["wh"].shape
    out_t = p["wp"].shape[1]
    ip, hp, op = (_round_up(in_t, LANE), _round_up(hid_t, LANE),
                  _round_up(out_t, LANE))
    return 4 * (ip * (hp + op) + hp * op + (hp + op) + 3 * op)


def residual_blocks_fused_forward(x, blocks, *, layer_norm=True):
    """Run a contiguous list of chained ResidualBlocks on the same rows as ONE
    pallas_call.  x: [rows, in] f32 -> [rows, out_of_last_block]."""
    rows, in_true0 = x.shape
    n = len(blocks)
    assert n >= 1 and blocks[0]["wh"].shape[0] == in_true0

    dims = []
    for p in blocks:
        in_t, hid_t = p["wh"].shape
        out_t = p["wp"].shape[1]
        dims.append((_round_up(in_t, LANE), _round_up(hid_t, LANE),
                     _round_up(out_t, LANE), out_t))
    in_pad0 = dims[0][0]
    out_padN = dims[-1][2]
    out_trueN = dims[-1][3]

    def const(shape):
        return pl.BlockSpec(shape, lambda i, _n=len(shape): (0,) * _n)

    args, specs, weight_bytes = [], [], 0
    for p, (ip, hp, op, _) in zip(blocks, dims):
        wcat = jnp.concatenate([_pad2d(p["wh"], ip, hp),
                                _pad2d(p["wr"], ip, op)], axis=1)
        bcat = jnp.concatenate([_pad2d(p["bh"].reshape(1, -1), 1, hp),
                                _pad2d(p["br"].reshape(1, -1), 1, op)], axis=1)
        wp = _pad2d(p["wp"], hp, op)
        bp = _pad2d(p["bp"].reshape(1, -1), 1, op)
        gamma = _pad2d(p["gamma"].reshape(1, -1), 1, op)
        beta = _pad2d(p["beta"].reshape(1, -1), 1, op)
        blk_args = [wcat, bcat, wp, bp, gamma, beta]
        args += blk_args
        specs += [const(a.shape) for a in blk_args]
        weight_bytes += sum(4 * a.size for a in blk_args)

    max_inner = max(hp + 2 * op for (_, hp, op, _) in dims)
    per_row = 2 * (in_pad0 + out_padN) + max_inner   # dbl-buffered io + temps
    tb = _tile_rows(rows, per_row, weight_bytes)
    rows_pad = _round_up(rows, tb)
    x_p = _pad2d(x, rows_pad, in_pad0)

    kernel = functools.partial(
        _residual_multi_kernel, n_blocks=n,
        hid_pads=tuple(hp for (_, hp, _, _) in dims),
        out_trues=tuple(float(ot) for (_, _, _, ot) in dims),
        layer_norm=layer_norm)

    out = pl.pallas_call(
        kernel,
        out_shape=jax.ShapeDtypeStruct((rows_pad, out_padN), x.dtype),
        grid=(rows_pad // tb,),
        in_specs=[pl.BlockSpec((tb, in_pad0), lambda i: (i, 0))] + specs,
        out_specs=pl.BlockSpec((tb, out_padN), lambda i: (i, 0)),
        compiler_params=pltpu.CompilerParams(
            dimension_semantics=("parallel",),
            vmem_limit_bytes=VMEM_LIMIT),
    )(x_p, *args)
    return out[:rows, :out_trueN]


def residual_sequence_forward(x, blocks, *, layer_norm=True,
                              weight_budget=WEIGHT_GROUP_BUDGET):
    """Fuse as many chained ResidualBlocks per pallas_call as the VMEM weight
    budget allows (greedy grouping; each group is one kernel launch)."""
    groups, cur, cur_bytes = [], [], 0
    for p in blocks:
        wb = _block_weight_bytes(p)
        if cur and cur_bytes + wb > weight_budget:
            groups.append(cur)
            cur, cur_bytes = [], 0
        cur.append(p)
        cur_bytes += wb
    groups.append(cur)
    for g in groups:
        x = residual_blocks_fused_forward(x, g, layer_norm=layer_norm)
    return x


def linear_add_forward(x, w, b, add):
    """out = x @ w + b + add (the final lookback projection + residual add)."""
    rows, in_true = x.shape
    out_true = w.shape[1]
    in_pad, out_pad = _round_up(in_true, LANE), _round_up(out_true, LANE)
    rows_pad = _round_up(rows, SUBLANE)
    x_p = _pad2d(x, rows_pad, in_pad)
    w_p = _pad2d(w, in_pad, out_pad)
    b_p = _pad2d(b.reshape(1, -1), 1, out_pad)
    add_p = _pad2d(add, rows_pad, out_pad)
    const = lambda shape: pl.BlockSpec(shape, lambda: (0,) * len(shape))
    out = pl.pallas_call(
        _linear_add_kernel,
        out_shape=jax.ShapeDtypeStruct((rows_pad, out_pad), x.dtype),
        in_specs=[const((rows_pad, in_pad)), const((in_pad, out_pad)),
                  const((1, out_pad)), const((rows_pad, out_pad))],
        out_specs=const((rows_pad, out_pad)),
        compiler_params=pltpu.CompilerParams(vmem_limit_bytes=VMEM_LIMIT),
    )(x_p, w_p, b_p, add_p)
    return out[:rows, :out_true]


# --------------------------------------------------------------------------
# TiDE forward (wrapper does only reshapes / concats; compute is in kernels)
# --------------------------------------------------------------------------
def tide_forward(batch, params, *, layer_norm=True):
    enc_cov = batch["encoder_covariates"]     # [B, L, C]
    dec_cov = batch["decoder_covariates"]     # [B, H, C]
    attrs = batch["attributes"]               # [B, S]
    enc_tgt = batch["encoder_target"]         # [B, L]
    B, L, C = enc_cov.shape
    H = dec_cov.shape[1]

    # Feature projection shared by encoder + decoder covariates: one call.
    cov_rows = jnp.concatenate([enc_cov.reshape(B * L, C),
                                dec_cov.reshape(B * H, C)], axis=0)
    fp = residual_blocks_fused_forward(cov_rows, [params["feature_projection"]],
                                       layer_norm=layer_norm)
    Fp = fp.shape[-1]
    enc_fp = fp[:B * L].reshape(B, L * Fp)
    dec_fp = fp[B * L:].reshape(B, H, Fp)

    history = jnp.concatenate([enc_tgt.reshape(B, -1), attrs, enc_fp], axis=-1)

    # Encoder + decoder stacks operate on the same [B, *] rows -> fuse the
    # whole chain into as few pallas_calls as VMEM allows (usually 1).
    decoded = residual_sequence_forward(
        history, list(params["encoder"]) + list(params["decoder"]),
        layer_norm=layer_norm)

    td_in = jnp.concatenate([decoded.reshape(B, H, -1), dec_fp], axis=-1)
    td_out = residual_blocks_fused_forward(
        td_in.reshape(B * H, td_in.shape[-1]), [params["temporal_decoder"]],
        layer_norm=layer_norm)                                  # [B*H, 1]
    td_out = td_out.reshape(B, H)

    y_hat = linear_add_forward(enc_tgt.reshape(B, -1), params["lookback_w"],
                               params["lookback_b"], td_out)    # [B, H]
    return y_hat.reshape(B, H, 1)


# --------------------------------------------------------------------------
# Parameter init (matches PyTorch nn.Linear shapes; weights stored [in, out])
# --------------------------------------------------------------------------
def _linear_params(key, fan_in, fan_out):
    k1, k2 = jax.random.split(key)
    bound = 1.0 / (fan_in ** 0.5)
    w = jax.random.uniform(k1, (fan_in, fan_out), jnp.float32, -bound, bound)
    b = jax.random.uniform(k2, (fan_out,), jnp.float32, -bound, bound)
    return w, b


def init_residual_block(key, input_size, hidden_size, output_size):
    kh, kp, kr = jax.random.split(key, 3)
    wh, bh = _linear_params(kh, input_size, hidden_size)
    wp, bp = _linear_params(kp, hidden_size, output_size)
    wr, br = _linear_params(kr, input_size, output_size)
    return {"wh": wh, "bh": bh, "wp": wp, "bp": bp, "wr": wr, "br": br,
            "gamma": jnp.ones((output_size,), jnp.float32),
            "beta": jnp.zeros((output_size,), jnp.float32)}


def init_residual_sequence(key, n_blocks, hidden_size, input_size, output_size):
    keys = jax.random.split(key, n_blocks)
    if n_blocks == 1:
        return [init_residual_block(keys[0], input_size, hidden_size, output_size)]
    blocks = [init_residual_block(keys[0], input_size, hidden_size, hidden_size)]
    for i in range(1, n_blocks - 1):
        blocks.append(init_residual_block(keys[i], hidden_size, hidden_size, hidden_size))
    blocks.append(init_residual_block(keys[-1], hidden_size, hidden_size, output_size))
    return blocks


def init_tide(key, *, ne_blocks, nd_blocks, hidden_size, covariates_size,
              lookback, decoder_output_size, temporal_decoder_hidden_size,
              feature_projection_output_size, feature_projection_hidden_size,
              horizon, static_covariates_size):
    k = jax.random.split(key, 5)
    params = {
        "feature_projection": init_residual_block(
            k[0], covariates_size, feature_projection_hidden_size,
            feature_projection_output_size),
        "temporal_decoder": init_residual_block(
            k[1], decoder_output_size // horizon + feature_projection_output_size,
            temporal_decoder_hidden_size, 1),
        "encoder": init_residual_sequence(
            k[3], ne_blocks, hidden_size,
            lookback + static_covariates_size
            + feature_projection_output_size * lookback,
            hidden_size),
        "decoder": init_residual_sequence(
            k[4], nd_blocks, hidden_size, hidden_size, decoder_output_size),
    }
    params["lookback_w"], params["lookback_b"] = _linear_params(k[2], lookback, horizon)
    return params


# --------------------------------------------------------------------------
# Pure-JAX reference
# --------------------------------------------------------------------------
def _residual_block_ref(x, p, layer_norm=True):
    residual = x @ p["wr"] + p["br"]
    h = jnp.maximum(x @ p["wh"] + p["bh"], 0.0)
    y = h @ p["wp"] + p["bp"]
    z = y + residual
    if not layer_norm:
        return z
    mean = jnp.mean(z, axis=-1, keepdims=True)
    var = jnp.mean((z - mean) ** 2, axis=-1, keepdims=True)
    return (z - mean) * jax.lax.rsqrt(var + LN_EPS) * p["gamma"] + p["beta"]


def tide_forward_ref(batch, params, *, layer_norm=True):
    enc_cov = batch["encoder_covariates"]
    dec_cov = batch["decoder_covariates"]
    attrs = batch["attributes"]
    enc_tgt = batch["encoder_target"]
    B = enc_cov.shape[0]
    H = dec_cov.shape[1]
    enc_fp = _residual_block_ref(enc_cov, params["feature_projection"], layer_norm)
    dec_fp = _residual_block_ref(dec_cov, params["feature_projection"], layer_norm)
    x = jnp.concatenate([enc_tgt.reshape(B, -1), attrs, enc_fp.reshape(B, -1)], axis=-1)
    for p in params["encoder"]:
        x = _residual_block_ref(x, p, layer_norm)
    for p in params["decoder"]:
        x = _residual_block_ref(x, p, layer_norm)
    td_in = jnp.concatenate([x.reshape(B, H, -1), dec_fp], axis=-1)
    td = _residual_block_ref(td_in, params["temporal_decoder"], layer_norm)
    rlp = (enc_tgt.reshape(B, -1) @ params["lookback_w"]
           + params["lookback_b"]).reshape(B, H, 1)
    return rlp + td


if __name__ == "__main__":
    B, lookback, horizon = 4, 8, 4
    covariates_size, static_covariates_size = 6, 3
    hidden_size = 32
    decoder_output_size = 8              # divisible by horizon
    temporal_decoder_hidden_size = 16
    feature_projection_output_size = 4
    feature_projection_hidden_size = 16
    ne_blocks, nd_blocks = 2, 3

    key = jax.random.PRNGKey(0)
    kp, k1, k2, k3, k4 = jax.random.split(key, 5)
    params = init_tide(
        kp, ne_blocks=ne_blocks, nd_blocks=nd_blocks, hidden_size=hidden_size,
        covariates_size=covariates_size, lookback=lookback,
        decoder_output_size=decoder_output_size,
        temporal_decoder_hidden_size=temporal_decoder_hidden_size,
        feature_projection_output_size=feature_projection_output_size,
        feature_projection_hidden_size=feature_projection_hidden_size,
        horizon=horizon, static_covariates_size=static_covariates_size)

    batch = {
        "encoder_covariates": jax.random.normal(
            k1, (B, lookback, covariates_size), jnp.float32),
        "decoder_covariates": jax.random.normal(
            k2, (B, horizon, covariates_size), jnp.float32),
        "attributes": jax.random.normal(k3, (B, static_covariates_size), jnp.float32),
        "encoder_target": jax.random.normal(k4, (B, lookback), jnp.float32),
        "decoder_target": jnp.zeros((B, horizon), jnp.float32),  # unused in forward
    }

    out = jax.block_until_ready(tide_forward(batch, params))
    ref = tide_forward_ref(batch, params)

    assert out.shape == (B, horizon, 1)
    err = float(jnp.max(jnp.abs(out - ref)))
    assert jnp.allclose(out, ref, atol=2e-3, rtol=2e-3), f"max abs err {err}"
    print("KERNEL_OK")
</pallas_src>

<mosaic_0001>
module attributes {stable_mosaic.version = 11 : i64} {
  func.func @_residual_multi_kernel(%arg0: i32, %arg1: memref<48x128xf32, #tpu.memory_space<vmem>>, %arg2: memref<128x256xf32, #tpu.memory_space<vmem>>, %arg3: memref<1x256xf32, #tpu.memory_space<vmem>>, %arg4: memref<128x128xf32, #tpu.memory_space<vmem>>, %arg5: memref<1x128xf32, #tpu.memory_space<vmem>>, %arg6: memref<1x128xf32, #tpu.memory_space<vmem>>, %arg7: memref<1x128xf32, #tpu.memory_space<vmem>>, %arg8: memref<48x128xf32, #tpu.memory_space<vmem>>) attributes {dimension_semantics = [#tpu.dimension_semantics<parallel>], iteration_bounds = array<i64: 1>, scalar_prefetch = 0 : i64, scratch_operands = 0 : i64, tpu.core_type = #tpu.core_type<tc>, window_params = [{transform_indices = @transform_0, window_bounds = array<i64: 48, 128>}, {pipeline_mode = #tpu.pipeline_mode<synchronous>, transform_indices = @transform_1, window_bounds = array<i64: 128, 256>}, {pipeline_mode = #tpu.pipeline_mode<synchronous>, transform_indices = @transform_2, window_bounds = array<i64: 1, 256>}, {pipeline_mode = #tpu.pipeline_mode<synchronous>, transform_indices = @transform_3, window_bounds = array<i64: 128, 128>}, {pipeline_mode = #tpu.pipeline_mode<synchronous>, transform_indices = @transform_4, window_bounds = array<i64: 1, 128>}, {pipeline_mode = #tpu.pipeline_mode<synchronous>, transform_indices = @transform_5, window_bounds = array<i64: 1, 128>}, {pipeline_mode = #tpu.pipeline_mode<synchronous>, transform_indices = @transform_6, window_bounds = array<i64: 1, 128>}, {transform_indices = @transform_7, window_bounds = array<i64: 48, 128>}]} {
    %c0 = arith.constant 0 : index
    %c0_0 = arith.constant 0 : index
    %0 = vector.load %arg1[%c0, %c0_0] : memref<48x128xf32, #tpu.memory_space<vmem>>, vector<48x128xf32>
    %c0_1 = arith.constant 0 : index
    %c0_2 = arith.constant 0 : index
    %1 = vector.load %arg2[%c0_1, %c0_2] : memref<128x256xf32, #tpu.memory_space<vmem>>, vector<128x256xf32>
    %cst = arith.constant dense<0.000000e+00> : vector<48x256xf32>
    %2 = tpu.matmul %0, %1, %cst {dimension_numbers = #tpu.dot_dimension_numbers<[1], [0], [0], [1], [0, 0, 1, 1], [], []>} : vector<48x128xf32>, vector<128x256xf32>, vector<48x256xf32> -> vector<48x256xf32>
    %c0_3 = arith.constant 0 : index
    %c0_4 = arith.constant 0 : index
    %3 = vector.load %arg3[%c0_3, %c0_4] : memref<1x256xf32, #tpu.memory_space<vmem>>, vector<1x256xf32>
    %4 = vector.broadcast %3 : vector<1x256xf32> to vector<48x256xf32>
    %5 = arith.addf %2, %4 : vector<48x256xf32>
    %6 = vector.extract_strided_slice %5 {offsets = [0, 0], sizes = [48, 128], strides = [1, 1]} : vector<48x256xf32> to vector<48x128xf32>
    %cst_5 = arith.constant 0.000000e+00 : f32
    %7 = vector.broadcast %cst_5 : f32 to vector<48x128xf32>
    %8 = arith.maximumf %6, %7 : vector<48x128xf32>
    %9 = vector.extract_strided_slice %5 {offsets = [0, 128], sizes = [48, 128], strides = [1, 1]} : vector<48x256xf32> to vector<48x128xf32>
    %c0_6 = arith.constant 0 : index
    %c0_7 = arith.constant 0 : index
    %10 = vector.load %arg4[%c0_6, %c0_7] : memref<128x128xf32, #tpu.memory_space<vmem>>, vector<128x128xf32>
    %cst_8 = arith.constant dense<0.000000e+00> : vector<48x128xf32>
    %11 = tpu.matmul %8, %10, %cst_8 {dimension_numbers = #tpu.dot_dimension_numbers<[1], [0], [0], [1], [0, 0, 1, 1], [], []>} : vector<48x128xf32>, vector<128x128xf32>, vector<48x128xf32> -> vector<48x128xf32>
    %c0_9 = arith.constant 0 : index
    %c0_10 = arith.constant 0 : index
    %12 = vector.load %arg5[%c0_9, %c0_10] : memref<1x128xf32, #tpu.memory_space<vmem>>, vector<1x128xf32>
    %13 = vector.broadcast %12 : vector<1x128xf32> to vector<48x128xf32>
    %14 = arith.addf %11, %13 : vector<48x128xf32>
    %15 = arith.addf %14, %9 : vector<48x128xf32>
    %cst_11 = arith.constant dense<0.000000e+00> : vector<48xf32>
    %16 = vector.multi_reduction <add>, %15, %cst_11 [1] : vector<48x128xf32> to vector<48xf32>
    %17 = vector.shape_cast %16 : vector<48xf32> to vector<48x1xf32>
    %18 = arith.mulf %15, %15 : vector<48x128xf32>
    %cst_12 = arith.constant dense<0.000000e+00> : vector<48xf32>
    %19 = vector.multi_reduction <add>, %18, %cst_12 [1] : vector<48x128xf32> to vector<48xf32>
    %20 = vector.shape_cast %19 : vector<48xf32> to vector<48x1xf32>
    %cst_13 = arith.constant 2.500000e-01 : f32
    %21 = vector.broadcast %cst_13 : f32 to vector<48x1xf32>
    %22 = arith.mulf %17, %21 : vector<48x1xf32>
    %cst_14 = arith.constant 2.500000e-01 : f32
    %23 = vector.broadcast %cst_14 : f32 to vector<48x1xf32>
    %24 = arith.mulf %20, %23 : vector<48x1xf32>
    %25 = arith.mulf %22, %22 : vector<48x1xf32>
    %26 = arith.subf %24, %25 : vector<48x1xf32>
    %cst_15 = arith.constant 0.000000e+00 : f32
    %27 = vector.broadcast %cst_15 : f32 to vector<48x1xf32>
    %28 = arith.maximumf %26, %27 : vector<48x1xf32>
    %29 = vector.broadcast %22 : vector<48x1xf32> to vector<48x128xf32>
    %30 = arith.subf %15, %29 : vector<48x128xf32>
    %cst_16 = arith.constant 9.99999974E-6 : f32
    %31 = vector.broadcast %cst_16 : f32 to vector<48x1xf32>
    %32 = arith.addf %28, %31 : vector<48x1xf32>
    %33 = math.rsqrt %32 : vector<48x1xf32>
    %34 = vector.broadcast %33 : vector<48x1xf32> to vector<48x128xf32>
    %35 = arith.mulf %30, %34 : vector<48x128xf32>
    %c0_17 = arith.constant 0 : index
    %c0_18 = arith.constant 0 : index
    %36 = vector.load %arg6[%c0_17, %c0_18] : memref<1x128xf32, #tpu.memory_space<vmem>>, vector<1x128xf32>
    %37 = vector.broadcast %36 : vector<1x128xf32> to vector<48x128xf32>
    %38 = arith.mulf %35, %37 : vector<48x128xf32>
    %c0_19 = arith.constant 0 : index
    %c0_20 = arith.constant 0 : index
    %39 = vector.load %arg7[%c0_19, %c0_20] : memref<1x128xf32, #tpu.memory_space<vmem>>, vector<1x128xf32>
    %40 = vector.broadcast %39 : vector<1x128xf32> to vector<48x128xf32>
    %41 = arith.addf %38, %40 : vector<48x128xf32>
    %c0_21 = arith.constant 0 : index
    %c0_22 = arith.constant 0 : index
    %42 = vector.load %arg8[%c0_21, %c0_22] : memref<48x128xf32, #tpu.memory_space<vmem>>, vector<48x128xf32>
    tpu.vector_store %arg8[%c0_21, %c0_22], %41 {strides = array<i32>} : memref<48x128xf32, #tpu.memory_space<vmem>>, vector<48x128xf32>,
    return
  }
  func.func @transform_0(%arg0: i32) -> (i32, i32) {
    %c0_i32 = arith.constant 0 : i32
    %c0_i32_0 = arith.constant 0 : i32
    return %arg0, %c0_i32 : i32, i32
  }
  func.func @transform_1(%arg0: i32) -> (i32, i32) {
    %c0_i32 = arith.constant 0 : i32
    %c0_i32_0 = arith.constant 0 : i32
    %c0_i32_1 = arith.constant 0 : i32
    return %c0_i32, %c0_i32_0 : i32, i32
  }
  func.func @transform_2(%arg0: i32) -> (i32, i32) {
    %c0_i32 = arith.constant 0 : i32
    %c0_i32_0 = arith.constant 0 : i32
    %c0_i32_1 = arith.constant 0 : i32
    return %c0_i32, %c0_i32_0 : i32, i32
  }
  func.func @transform_3(%arg0: i32) -> (i32, i32) {
    %c0_i32 = arith.constant 0 : i32
    %c0_i32_0 = arith.constant 0 : i32
    %c0_i32_1 = arith.constant 0 : i32
    return %c0_i32, %c0_i32_0 : i32, i32
  }
  func.func @transform_4(%arg0: i32) -> (i32, i32) {
    %c0_i32 = arith.constant 0 : i32
    %c0_i32_0 = arith.constant 0 : i32
    %c0_i32_1 = arith.constant 0 : i32
    return %c0_i32, %c0_i32_0 : i32, i32
  }
  func.func @transform_5(%arg0: i32) -> (i32, i32) {
    %c0_i32 = arith.constant 0 : i32
    %c0_i32_0 = arith.constant 0 : i32
    %c0_i32_1 = arith.constant 0 : i32
    return %c0_i32, %c0_i32_0 : i32, i32
  }
  func.func @transform_6(%arg0: i32) -> (i32, i32) {
    %c0_i32 = arith.constant 0 : i32
    %c0_i32_0 = arith.constant 0 : i32
    %c0_i32_1 = arith.constant 0 : i32
    return %c0_i32, %c0_i32_0 : i32, i32
  }
  func.func @transform_7(%arg0: i32) -> (i32, i32) {
    %c0_i32 = arith.constant 0 : i32
    %c0_i32_0 = arith.constant 0 : i32
    return %arg0, %c0_i32 : i32, i32
  }
}

</mosaic_0001>

<bundles_post_ra>
// kernel: tpu_custom_call.1
= control target key start
LH: loop header
LB: loop body
LE: loop exit
PB: predicated region body
PF: predicated region fallthrough
CT: control target
= control target key end

     0   :  { %12 = vsyncpa [#allocation3], 0  ;;  %s788_s0 = inlined_call_operand.hbm [shape: f32[48,128], index: 0, kind: input, shape index: {}]   ;;  %s789_s1 = inlined_call_operand.hbm [shape: f32[128,256], index: 1, kind: input, shape index: {}]   ;;  %s790_s2 = inlined_call_operand.hbm [shape: f32[1,256], index: 2, kind: input, shape index: {}]   ;;  %s791_s3 = inlined_call_operand.hbm [shape: f32[128,128], index: 3, kind: input, shape index: {}]   ;;  %s792_s4 = inlined_call_operand.vmem [shape: f32[1,128], index: 4, kind: input, shape index: {}]   ;;  %s793_s5 = inlined_call_operand.vmem [shape: f32[1,128], index: 5, kind: input, shape index: {}]   ;;  %s794_s6 = inlined_call_operand.vmem [shape: f32[1,128], index: 6, kind: input, shape index: {}]   ;;  %s795_s7 = inlined_call_operand.hbm [shape: f32[48,128], index: 7, kind: output, shape index: {}]  }
   0x1   :  { %13 = vsyncpa [#allocation6], 0 }
   0x2   :  { %14 = vsyncpa [#allocation9], 0  ;;  %s33_s26 = sshll.u32 %s789_s1, 4  ;;  %s34_s26 = int_to_ptr.hbm [resolvable:$true] %s33_s26 }
   0x3   :  { %15 = vsyncpa [#allocation4], 0  ;;  %s622_s27 = smov [#allocation5]   ;;  %s20_s8 = sshll.u32 %s788_s0, 4  ;;  %s21_s8 = int_to_ptr.hbm [resolvable:$true] %s20_s8 }
   0x4   :  { %s35_s28 = sshll.u32 %s622_s27, 4  ;;  %s623_s9 = smov 256   ;;  %s36_s28 = int_to_ptr.vmem [resolvable:$true] %s35_s28 }
   0x5   :  { %s624_s10 = smov 16   ;;  %s625_s11 = smov [#allocation2]  }
   0x6   :  { %41 = dma.hbm_to_vmem [thread:$0]  %s34_s26, 4096, %s36_s28, [#allocation6], %s623_s9, %s623_s9, %s624_s10  }
   0x7   :  { %s22_s12 = sshll.u32 %s625_s11, 4  ;;  %s626_s13 = smov 128   ;;  %s23_s12 = int_to_ptr.vmem [resolvable:$true] %s22_s12 }
   0x8   :  { %s627_s14 = smov 8   ;;  %s47_s16 = sshll.u32 %s790_s2, 4  ;;  %s48_s16 = int_to_ptr.hbm [resolvable:$true] %s47_s16 }
   0x9   :  { %28 = dma.hbm_to_vmem [thread:$0]  %s21_s8, 768, %s23_s12, [#allocation3], %s626_s13, %s626_s13, %s627_s14  }
   0xa   :  { %s628_s17 = smov [#allocation7]   ;;  %s57_s20 = sshll.u32 %s791_s3, 4  ;;  %s58_s20 = int_to_ptr.hbm [resolvable:$true] %s57_s20 }
   0xb   :  { %s49_s0 = sshll.u32 %s628_s17, 4  ;;  %s629_s21 = smov [#allocation8]   ;;  %s50_s0 = int_to_ptr.vmem [resolvable:$true] %s49_s0 }
   0xc   :  { %52 = dma.hbm_to_vmem [thread:$0]  %s48_s16, 32, %s50_s0, [#allocation6]  }
   0xd   :  { %s59_s22 = sshll.u32 %s629_s21, 4  ;;  %s60_s22 = int_to_ptr.vmem [resolvable:$true] %s59_s22 }
   0xe   :  { %65 = dma.hbm_to_vmem [thread:$0]  %s58_s20, 2048, %s60_s22, [#allocation9], %s626_s13, %s626_s13, %s627_s14  }
   0xf   :  { %614 = dma.done.wait [#allocation3], 768  }
  0x10   :  { %615 = vsyncadd [#allocation3], 4294966528 }
  0x11   :  { %616 = dma.done.wait [#allocation6], 4128  }
  0x12   :  { %617 = vsyncadd [#allocation6], 4294963168 }
  0x13   :  { %618 = dma.done.wait [#allocation9], 2048  }
  0x14   :  { %619 = vsyncadd [#allocation9], 4294965248  ;;  %v124_v0 = vld [vmem:[#allocation5 + $0xf0] sm:$0xff]  ;;  %v122_v1 = vld [vmem:[#allocation5 + $0xe0] sm:$0xff]  ;;  %s439_s28 = sshll.u32 %s795_s7, 4  ;;  %s440_s28 = int_to_ptr.hbm [resolvable:$true] %s439_s28 }
  0x15   :  { %132 = vmatpush.msra.mxu0 %v124_v0  ;;  %454 = vmatpush.msra.mxu3 %v124_v0  ;;  %v120_v2 = vld [vmem:[#allocation5 + $0xd0] sm:$0xff]  ;;  %v118_v3 = vld [vmem:[#allocation5 + $0xc0] sm:$0xff]  ;;  %v691_v17 = vld [vmem:[#allocation2 + $0x8] sm:$0xff] }
  0x16   :  { %v116_v4 = vld [vmem:[#allocation5 + $0xb0] sm:$0xff]  ;;  %v114_v5 = vld [vmem:[#allocation5 + $0xa0] sm:$0xff]  ;;  %v125_v20 = vld [vmem:[#allocation5 + $0xf8] sm:$0xff] }
  0x17   :  { %133 = vmatpush.msra.mxu0 %v122_v1  ;;  %455 = vmatpush.msra.mxu3 %v122_v1  ;;  %v112_v6 = vld [vmem:[#allocation5 + $0x90] sm:$0xff]  ;;  %v110_v7 = vld [vmem:[#allocation5 + $0x80] sm:$0xff]  ;;  %v123_v21 = vld [vmem:[#allocation5 + $0xe8] sm:$0xff] }
  0x18   :  { %v108_v8 = vld [vmem:[#allocation5 + $0x70] sm:$0xff]  ;;  %v106_v9 = vld [vmem:[#allocation5 + $0x60] sm:$0xff]  ;;  %167 = vmatpush.msra.mxu1 %v125_v20  ;;  %v121_v23 = vld [vmem:[#allocation5 + $0xd8] sm:$0xff] }
  0x19   :  { %134 = vmatpush.msra.mxu0 %v120_v2  ;;  %456 = vmatpush.msra.mxu3 %v120_v2  ;;  %v104_v10 = vld [vmem:[#allocation5 + $0x50] sm:$0xff]  ;;  %v102_v11 = vld [vmem:[#allocation5 + $0x40] sm:$0xff]  ;;  %v119_v26 = vld [vmem:[#allocation5 + $0xc8] sm:$0xff] }
  0x1a   :  { %v100_v12 = vld [vmem:[#allocation5 + $0x30] sm:$0xff]  ;;  %v98_v13 = vld [vmem:[#allocation5 + $0x20] sm:$0xff]  ;;  %168 = vmatpush.msra.mxu1 %v123_v21  ;;  %v117_v28 = vld [vmem:[#allocation5 + $0xb8] sm:$0xff] }
  0x1b   :  { %135 = vmatpush.msra.mxu0 %v118_v3  ;;  %457 = vmatpush.msra.mxu3 %v118_v3  ;;  %v96_v14 = vld [vmem:[#allocation5 + $0x10] sm:$0xff]  ;;  %v94_v15 = vld [vmem:[#allocation5] sm:$0xff]  ;;  %v115_v30 = vld [vmem:[#allocation5 + $0xa8] sm:$0xff] }
  0x1c   :  { %v689_v16 = vld [vmem:[#allocation2] sm:$0xff]  ;;  %v223_v18 = vld [vmem:[#allocation8 + $0x78] sm:$0xff]  ;;  %v220_v24 = vld [vmem:[#allocation8 + $0x60] sm:$0xff]  ;;  %169 = vmatpush.msra.mxu1 %v121_v23 }
  0x1d   :  { %136 = vmatpush.msra.mxu0 %v116_v4  ;;  %458 = vmatpush.msra.mxu3 %v116_v4  ;;  %v222_v19 = vld [vmem:[#allocation8 + $0x70] sm:$0xff]  ;;  %v221_v22 = vld [vmem:[#allocation8 + $0x68] sm:$0xff]  ;;  %v695_v25 = vld [vmem:[#allocation2 + $0x10] sm:$0xff] }
  0x1e   :  { %228 = vmatpush.msra.mxu2 %v223_v18  ;;  %v219_v27 = vld [vmem:[#allocation8 + $0x58] sm:$0xff]  ;;  %v218_v29 = vld [vmem:[#allocation8 + $0x50] sm:$0xff]  ;;  %170 = vmatpush.msra.mxu1 %v119_v26  ;;  %v217_v31 = vld [vmem:[#allocation8 + $0x48] sm:$0xff] }
  0x1f   :  { %137 = vmatpush.msra.mxu0 %v114_v5  ;;  %459 = vmatpush.msra.mxu3 %v114_v5  ;;  %v113_v32 = vld [vmem:[#allocation5 + $0x98] sm:$0xff]  ;;  %v216_v33 = vld [vmem:[#allocation8 + $0x40] sm:$0xff]  ;;  %v213_v40 = vld [vmem:[#allocation8 + $0x28] sm:$0xff] }
  0x20   :  { %229 = vmatpush.msra.mxu2 %v222_v19  ;;  %171 = vmatpush.msra.mxu1 %v117_v28  ;;  %v91_v34 = vld [vmem:[#allocation2 + $0x18] sm:$0xff]  ;;  %v215_v36 = vld [vmem:[#allocation8 + $0x38] sm:$0xff]  ;;  %v214_v38 = vld [vmem:[#allocation8 + $0x30] sm:$0xff] }
  0x21   :  { %138 = vmatpush.msra.mxu0 %v112_v6  ;;  %460 = vmatpush.msra.mxu3 %v112_v6  ;;  %v111_v35 = vld [vmem:[#allocation5 + $0x88] sm:$0xff]  ;;  %v109_v37 = vld [vmem:[#allocation5 + $0x78] sm:$0xff]  ;;  %v92_v42 = vld [vmem:[#allocation2 + $0x20] sm:$0xff] }
  0x22   :  { %230 = vmatpush.msra.mxu2 %v221_v22  ;;  %172 = vmatpush.msra.mxu1 %v115_v30  ;;  %v107_v39 = vld [vmem:[#allocation5 + $0x68] sm:$0xff]  ;;  %v211_v43 = vld [vmem:[#allocation8 + $0x18] sm:$0xff]  ;;  %v210_v46 = vld [vmem:[#allocation8 + $0x10] sm:$0xff] }
  0x23   :  { %139 = vmatpush.msra.mxu0 %v110_v7  ;;  %461 = vmatpush.msra.mxu3 %v110_v7  ;;  %v212_v41 = vld [vmem:[#allocation8 + $0x20] sm:$0xff]  ;;  %v93_v44 = vld [vmem:[#allocation2 + $0x28] sm:$0xff]  ;;  %v209_v48 = vld [vmem:[#allocation8 + $0x8] sm:$0xff] }
  0x24   :  { %231 = vmatpush.msra.mxu2 %v220_v24  ;;  %173 = vmatpush.msra.mxu1 %v113_v32  ;;  %v105_v45 = vld [vmem:[#allocation5 + $0x58] sm:$0xff]  ;;  %v103_v47 = vld [vmem:[#allocation5 + $0x48] sm:$0xff]  ;;  %v126_v54 = vld [vmem:[#allocation7] sm:$0x3] }
  0x25   :  { %140 = vmatpush.msra.mxu0 %v108_v8  ;;  %462 = vmatpush.msra.mxu3 %v108_v8  ;;  %v101_v49 = vld [vmem:[#allocation5 + $0x38] sm:$0xff]  ;;  %v208_v50 = vld [vmem:[#allocation8] sm:$0xff]  ;;  %v128_v55 = vperm.slane %v126_v54, 0 }
  0x26   :  { %232 = vmatpush.msra.mxu2 %v219_v27  ;;  %174 = vmatpush.msra.mxu1 %v111_v35  ;;  %v99_v51 = vld [vmem:[#allocation5 + $0x28] sm:$0xff]  ;;  %v97_v52 = vld [vmem:[#allocation5 + $0x18] sm:$0xff] }
  0x27   :  { %141 = vmatpush.msra.mxu0 %v106_v9  ;;  %463 = vmatpush.msra.mxu3 %v106_v9  ;;  %v95_v53 = vld [vmem:[#allocation5 + $0x8] sm:$0xff] }
  0x28   :  { %233 = vmatpush.msra.mxu2 %v218_v29  ;;  %175 = vmatpush.msra.mxu1 %v109_v37 }
  0x29   :  { %142 = vmatpush.msra.mxu0 %v104_v10  ;;  %464 = vmatpush.msra.mxu3 %v104_v10 }
  0x2a   :  { %234 = vmatpush.msra.mxu2 %v217_v31  ;;  %176 = vmatpush.msra.mxu1 %v107_v39 }
  0x2b   :  { %143 = vmatpush.msra.mxu0 %v102_v11  ;;  %465 = vmatpush.msra.mxu3 %v102_v11  ;;  %v129_v11 = vperm.slane %v126_v54, 1 }
  0x2c   :  { %235 = vmatpush.msra.mxu2 %v216_v33  ;;  %177 = vmatpush.msra.mxu1 %v105_v45 }
  0x2d   :  { %144 = vmatpush.msra.mxu0 %v100_v12  ;;  %466 = vmatpush.msra.mxu3 %v100_v12 }
  0x2e   :  { %236 = vmatpush.msra.mxu2 %v215_v36  ;;  %178 = vmatpush.msra.mxu1 %v103_v47 }
  0x2f   :  { %145 = vmatpush.msra.mxu0 %v98_v13  ;;  %467 = vmatpush.msra.mxu3 %v98_v13  ;;  %v479_v13 = vld [vmem:[%s792_s4] ss:$0 sm:$0xff] }
  0x30   :  { %237 = vmatpush.msra.mxu2 %v214_v38  ;;  %179 = vmatpush.msra.mxu1 %v101_v49 }
  0x31   :  { %146 = vmatpush.msra.mxu0 %v96_v14  ;;  %468 = vmatpush.msra.mxu3 %v96_v14 }
  0x32   :  { %238 = vmatpush.msra.mxu2 %v213_v40  ;;  %180 = vmatpush.msra.mxu1 %v99_v51 }
  0x33   :  { %147 = vmatpush.msra.mxu0 %v94_v15  ;;  %469 = vmatpush.msra.mxu3 %v94_v15 }
  0x34   :  { %148 = vmatmul.f32.vlgmr.msra.gmra.mxu0 %v689_v16  ;;  %151 = vmatmul.f32.vlgmr.msra.gmra.mxu3 %v691_v17 }
  0x35   :  { %239 = vmatpush.msra.mxu2 %v212_v41  ;;  %181 = vmatpush.msra.mxu1 %v97_v52 }
  0x37   :  { %240 = vmatpush.msra.mxu2 %v211_v43  ;;  %182 = vmatpush.msra.mxu1 %v95_v53 }
  0x38   :  { %183 = vmatmul.f32.vlgmr.msra.gmra.mxu1 %v689_v16 }
  0x39   :  { %241 = vmatpush.msra.mxu2 %v210_v46 }
  0x3b   :  { %242 = vmatpush.msra.mxu2 %v209_v48 }
  0x3c   :  { %154 = vmatmul.f32.gmra.mxu3 %v695_v25 }
  0x3d   :  { %243 = vmatpush.msra.mxu2 %v208_v50 }
  0x40   :  { %186 = vmatmul.f32.gmra.mxu1 %v691_v17 }
  0x44   :  { %157 = vmatmul.f32.gmra.mxu3 %v91_v34 }
  0x48   :  { %189 = vmatmul.f32.gmra.mxu1 %v695_v25 }
  0x4c   :  { %160 = vmatmul.f32.gmra.mxu3 %v92_v42 }
  0x50   :  { %192 = vmatmul.f32.gmra.mxu1 %v91_v34 }
  0x54   :  { %163 = vmatmul.f32.gmra.mxu3 %v93_v44 }
  0x58   :  { %195 = vmatmul.f32.gmra.mxu1 %v92_v42 }
  0x60   :  { %198 = vmatmul.f32.gmra.mxu1 %v93_v44 }
  0xb1   :  { %v149_v56 = vpop.f32.mrf.mxu0 }
  0xb2   :  { %v150_v57 = vadd.f32 %v149_v56, %v128_v55 }
  0xb4   :  { %v202_v58 = vmax.f32 %v150_v57, 0.0 }
  0xb5   :  { %v184_v10 = vpop.f32.mrf.mxu1 }
  0xb6   :  { %244 = vmatmul.f32.vlgmr.msra.gmra.mxu2 %v202_v58  ;;  %v185_v14 = vadd.f32 %v184_v10, %v129_v11 }
  0xb7   :  { %v152_v59 = vpop.f32.mrf.mxu3 }
  0xb8   :  { %v153_v60 = vadd.f32 %v152_v59, %v128_v55 }
  0xba   :  { %v203_v61 = vmax.f32 %v153_v60, 0.0 }
  0xbd   :  { %v187_v12 = vpop.f32.mrf.mxu1 }
  0xbe   :  { %247 = vmatmul.f32.gmra.mxu2 %v203_v61  ;;  %v188_v19 = vadd.f32 %v187_v12, %v129_v11 }
  0xbf   :  { %v155_v62 = vpop.f32.mrf.mxu3 }
  0xc0   :  { %v156_v63 = vadd.f32 %v155_v62, %v128_v55 }
  0xc2   :  { %v204_v0 = vmax.f32 %v156_v63, 0.0 }
  0xc5   :  { %v190_v18 = vpop.f32.mrf.mxu1 }
  0xc6   :  { %250 = vmatmul.f32.gmra.mxu2 %v204_v0  ;;  %v191_v25 = vadd.f32 %v190_v18, %v129_v11 }
  0xc7   :  { %v158_v1 = vpop.f32.mrf.mxu3 }
  0xc8   :  { %v159_v2 = vadd.f32 %v158_v1, %v128_v55 }
  0xca   :  { %v205_v3 = vmax.f32 %v159_v2, 0.0 }
  0xcd   :  { %v193_v27 = vpop.f32.mrf.mxu1 }
  0xce   :  { %253 = vmatmul.f32.gmra.mxu2 %v205_v3  ;;  %v194_v31 = vadd.f32 %v193_v27, %v129_v11 }
  0xcf   :  { %v161_v4 = vpop.f32.mrf.mxu3 }
  0xd0   :  { %v162_v5 = vadd.f32 %v161_v4, %v128_v55 }
  0xd2   :  { %v206_v6 = vmax.f32 %v162_v5, 0.0 }
  0xd5   :  { %v196_v34 = vpop.f32.mrf.mxu1 }
  0xd6   :  { %256 = vmatmul.f32.gmra.mxu2 %v206_v6  ;;  %v197_v37 = vadd.f32 %v196_v34, %v129_v11 }
  0xd7   :  { %v164_v7 = vpop.f32.mrf.mxu3 }
  0xd8   :  { %v165_v8 = vadd.f32 %v164_v7, %v128_v55 }
  0xda   :  { %v207_v9 = vmax.f32 %v165_v8, 0.0 }
  0xdd   :  { %v199_v41 = vpop.f32.mrf.mxu1 }
  0xde   :  { %259 = vmatmul.f32.gmra.mxu2 %v207_v9  ;;  %v200_v43 = vadd.f32 %v199_v41, %v129_v11 }
 0x139   :  { %v245_v15 = vpop.f32.mrf.mxu2 }
 0x13a   :  { %v246_v16 = vadd.f32 %v479_v13, %v245_v15 }
 0x13c   :  { %v704_v17 = vadd.f32 %v246_v16, %v185_v14 }
 0x13e   :  { %269 = vadd.xlane.f32.xlu0 %v704_v17  ;;  %v281_v23 = vmul.f32 %v704_v17, %v704_v17 }
 0x141   :  { %v248_v20 = vpop.f32.mrf.mxu2 }
 0x142   :  { %v249_v21 = vadd.f32 %v479_v13, %v248_v20 }
 0x144   :  { %v707_v22 = vadd.f32 %v249_v21, %v188_v19 }
 0x146   :  { %287 = vadd.xlane.f32.xlu0 %v281_v23  ;;  %v282_v24 = vmul.f32 %v707_v22, %v707_v22 }
 0x148   :  { %289 = vadd.xlane.f32.xlu1 %v282_v24 }
 0x149   :  { %v251_v26 = vpop.f32.mrf.mxu2 }
 0x14a   :  { %v252_v28 = vadd.f32 %v479_v13, %v251_v26 }
 0x14c   :  { %v713_v29 = vadd.f32 %v252_v28, %v191_v25  ;;  %v750_v25 = vld [vmem:[%s793_s5] ss:$0 sm:$0xff]  ;;  %s630_s5 = smov [#allocation10]  }
 0x14e   :  { %271 = vadd.xlane.f32.xlu0 %v707_v22  ;;  %v283_v30 = vmul.f32 %v713_v29, %v713_v29 }
 0x150   :  { %291 = vadd.xlane.f32.xlu2 %v283_v30  ;;  %273 = vadd.xlane.f32.xlu1 %v713_v29 }
 0x151   :  { %v254_v32 = vpop.f32.mrf.mxu2 }
 0x152   :  { %v255_v33 = vadd.f32 %v479_v13, %v254_v32 }
 0x154   :  { %v719_v35 = vadd.f32 %v255_v33, %v194_v31  ;;  %v757_v33 = vld [vmem:[%s794_s6] ss:$0 sm:$0xff]  ;;  %s437_s6 = sshll.u32 %s630_s5, 4  ;;  %s438_s6 = int_to_ptr.vmem [resolvable:$true] %s437_s6 }
 0x156   :  { %v284_v36 = vmul.f32 %v719_v35, %v719_v35 }
 0x158   :  { %275 = vadd.xlane.f32.xlu1 %v719_v35  ;;  %293 = vadd.xlane.f32.xlu0 %v284_v36 }
 0x159   :  { %v257_v38 = vpop.f32.mrf.mxu2 }
 0x15a   :  { %v258_v39 = vadd.f32 %v479_v13, %v257_v38 }
 0x15c   :  { %v724_v40 = vadd.f32 %v258_v39, %v197_v37 }
 0x15e   :  { %277 = vadd.xlane.f32.xlu2 %v724_v40  ;;  %v285_v42 = vmul.f32 %v724_v40, %v724_v40 }
 0x160   :  { %295 = vadd.xlane.f32.xlu1 %v285_v42 }
 0x161   :  { %v260_v44 = vpop.f32.mrf.mxu2 }
 0x162   :  { %v261_v45 = vadd.f32 %v479_v13, %v260_v44 }
 0x164   :  { %v729_v46 = vadd.f32 %v261_v45, %v200_v43 }
 0x166   :  { %279 = vadd.xlane.f32.xlu2 %v729_v46  ;;  %v286_v47 = vmul.f32 %v729_v46, %v729_v46 }
 0x16e   :  { %297 = vadd.xlane.f32.xlu2 %v286_v47 }
 0x1b1   :  { %v270_v48 = vpop.xlane.xlu0 %269 }
 0x1b2   :  { %v299_v49 = vmul.f32 0.25, %v270_v48 }
 0x1b4   :  { %v311_v51 = vmul.f32 %v299_v49, %v299_v49  ;;  %v329_v24 = vsub.f32 %v704_v17, %v299_v49 }
 0x1b9   :  { %v288_v50 = vpop.xlane.xlu0 %287 }
 0x1ba   :  { %v305_v52 = vmul.f32 0.25, %v288_v50 }
 0x1bb   :  { %v290_v53 = vpop.xlane.xlu1 %289 }
 0x1bc   :  { %v317_v54 = vsub.f32 %v305_v52, %v311_v51  ;;  %v306_v61 = vmul.f32 0.25, %v290_v53 }
 0x1be   :  { %v323_v55 = vmax.f32 %v317_v54, 0.0 }
 0x1c0   :  { %v335_v56 = vadd.f32 1e-05, %v323_v55 }
 0x1c1   :  { %v272_v57 = vpop.xlane.xlu0 %271 }
 0x1c2   :  { %482 = vrsqrt.f32 %v335_v56  ;;  %v734_v58 = vmul.f32 0.25, %v272_v57  ;;  %vm347_vm1 = vweird.f32 %v335_v56 }
 0x1c3   :  { %v292_v59 = vpop.xlane.xlu2 %291  ;;  %v274_v60 = vpop.xlane.xlu1 %273 }
 0x1c4   :  { %v312_v62 = vmul.f32 %v734_v58, %v734_v58  ;;  %v738_v63 = vmul.f32 0.25, %v274_v60  ;;  %v307_v1 = vmul.f32 0.25, %v292_v59  ;;  %v330_v55 = vsub.f32 %v707_v22, %v734_v58 }
 0x1c6   :  { %v318_v0 = vsub.f32 %v306_v61, %v312_v62  ;;  %v313_v2 = vmul.f32 %v738_v63, %v738_v63  ;;  %v331_v61 = vsub.f32 %v713_v29, %v738_v63 }
 0x1c8   :  { %v483_v3 = vpop.eup %482  ;;  %v324_v4 = vmax.f32 %v318_v0, 0.0  ;;  %v319_v5 = vsub.f32 %v307_v1, %v313_v2 }
 0x1c9   :  { %v342_v6 = vmul.f32 %v483_v3, %v335_v56  ;;  %vm348_vm0 = vweird.f32 %v483_v3 }
 0x1ca   :  { %v336_v7 = vadd.f32 1e-05, %v324_v4  ;;  %v325_v8 = vmax.f32 %v319_v5, 0.0  ;;  %vm349_vm2 = vmor %vm347_vm1, %vm348_vm0 }
 0x1cb   :  { %v343_v9 = vmul.f32 %v483_v3, %v342_v6  ;;  %v276_v10 = vpop.xlane.xlu1 %275  ;;  %v294_v11 = vpop.xlane.xlu0 %293 }
 0x1cc   :  { %484 = vrsqrt.f32 %v336_v7  ;;  %v337_v12 = vadd.f32 1e-05, %v325_v8  ;;  %v742_v13 = vmul.f32 0.25, %v276_v10  ;;  %v308_v16 = vmul.f32 0.25, %v294_v11 }
 0x1cd   :  { %v344_v14 = vmul.f32 0.5, %v343_v9  ;;  %vm357_vm4 = vweird.f32 %v336_v7 }
 0x1ce   :  { %486 = vrsqrt.f32 %v337_v12  ;;  %v314_v15 = vmul.f32 %v742_v13, %v742_v13  ;;  %vm367_vm7 = vweird.f32 %v337_v12 }
 0x1cf   :  { %v345_v18 = vsub.f32 1.5, %v344_v14 }
 0x1d0   :  { %v320_v19 = vsub.f32 %v308_v16, %v314_v15 }
 0x1d1   :  { %v346_v20 = vmul.f32 %v483_v3, %v345_v18  ;;  %v278_v21 = vpop.xlane.xlu2 %277 }
 0x1d2   :  { %v485_v23 = vpop.eup %484  ;;  %v326_v26 = vmax.f32 %v320_v19, 0.0  ;;  %v752_v27 = vmul.f32 0.25, %v278_v21 }
 0x1d3   :  { %v350_v28 = vsel %vm349_vm2, %v483_v3, %v346_v20  ;;  %v352_v30 = vmul.f32 %v485_v23, %v336_v7  ;;  %v296_v31 = vpop.xlane.xlu1 %295  ;;  %vm358_vm3 = vweird.f32 %v485_v23 }
 0x1d4   :  { %v487_v32 = vpop.eup %486  ;;  %v401_v34 = vmul.f32 %v350_v28, %v329_v24  ;;  %v338_v17 = vadd.f32 1e-05, %v326_v26  ;;  %v315_v36 = vmul.f32 %v752_v27, %v752_v27  ;;  %v309_v39 = vmul.f32 0.25, %v296_v31  ;;  %vm359_vm6 = vmor %vm357_vm4, %vm358_vm3 }
 0x1d5   :  { %v353_v37 = vmul.f32 %v485_v23, %v352_v30  ;;  %v362_v38 = vmul.f32 %v487_v32, %v337_v12  ;;  %vm368_vm5 = vweird.f32 %v487_v32  ;;  %v332_v12 = vsub.f32 %v719_v35, %v742_v13 }
 0x1d6   :  { %v411_v41 = vmul.f32 %v750_v25, %v401_v34  ;;  %488 = vrsqrt.f32 %v338_v17  ;;  %v321_v44 = vsub.f32 %v309_v39, %v315_v36  ;;  %vm369_vm8 = vmor %vm367_vm7, %vm368_vm5  ;;  %vm377_vm10 = vweird.f32 %v338_v17 }
 0x1d7   :  { %v354_v42 = vmul.f32 0.5, %v353_v37  ;;  %v363_v43 = vmul.f32 %v487_v32, %v362_v38  ;;  %v333_v35 = vsub.f32 %v724_v40, %v752_v27 }
 0x1d8   :  { %v421_v45 = vadd.f32 %v757_v33, %v411_v41  ;;  %v327_v49 = vmax.f32 %v321_v44, 0.0 }
 0x1d9   :  { %v355_v47 = vsub.f32 1.5, %v354_v42  ;;  %v364_v48 = vmul.f32 0.5, %v363_v43  ;;  %v280_v50 = vpop.xlane.xlu2 %279 }
 0x1da   :  { %427 = vst [vmem:[#allocation10] sm:$0xff] %v421_v45  ;;  %v339_v53 = vadd.f32 1e-05, %v327_v49  ;;  %v304_v62 = vmul.f32 0.25, %v280_v50 }
 0x1db   :  { %v356_v51 = vmul.f32 %v485_v23, %v355_v47  ;;  %v365_v52 = vsub.f32 1.5, %v364_v48 }
 0x1dc   :  { %v489_v54 = vpop.eup %488  ;;  %490 = vrsqrt.f32 %v339_v53  ;;  %v316_v6 = vmul.f32 %v304_v62, %v304_v62  ;;  %vm387_vm13 = vweird.f32 %v339_v53  ;;  %v334_v39 = vsub.f32 %v729_v46, %v304_v62 }
 0x1dd   :  { %v360_v56 = vsel %vm359_vm6, %v485_v23, %v356_v51  ;;  %v366_v57 = vmul.f32 %v487_v32, %v365_v52  ;;  %v372_v59 = vmul.f32 %v489_v54, %v338_v17  ;;  %vm378_vm9 = vweird.f32 %v489_v54 }
 0x1de   :  { %v402_v60 = vmul.f32 %v360_v56, %v330_v55  ;;  %vm379_vm11 = vmor %vm377_vm10, %vm378_vm9 }
 0x1df   :  { %v370_v0 = vsel %vm369_vm8, %v487_v32, %v366_v57  ;;  %v373_v1 = vmul.f32 %v489_v54, %v372_v59 }
 0x1e0   :  { %v412_v2 = vmul.f32 %v750_v25, %v402_v60  ;;  %v403_v3 = vmul.f32 %v370_v0, %v331_v61 }
 0x1e1   :  { %v374_v4 = vmul.f32 0.5, %v373_v1  ;;  %v298_v5 = vpop.xlane.xlu2 %297 }
 0x1e2   :  { %v422_v22 = vadd.f32 %v757_v33, %v412_v2  ;;  %v413_v58 = vmul.f32 %v750_v25, %v403_v3  ;;  %v310_v7 = vmul.f32 0.25, %v298_v5  ;;  %v491_v9 = vpop.eup %490 }
 0x1e3   :  { %v375_v8 = vsub.f32 1.5, %v374_v4  ;;  %v382_v11 = vmul.f32 %v491_v9, %v339_v53  ;;  %vm388_vm12 = vweird.f32 %v491_v9 }
 0x1e4   :  { %428 = vst [vmem:[#allocation10 + $0x8] sm:$0xff] %v422_v22  ;;  %v423_v29 = vadd.f32 %v757_v33, %v413_v58  ;;  %v322_v63 = vsub.f32 %v310_v7, %v316_v6  ;;  %vm389_vm14 = vmor %vm387_vm13, %vm388_vm12 }
 0x1e5   :  { %v376_v10 = vmul.f32 %v489_v54, %v375_v8  ;;  %v383_v16 = vmul.f32 %v491_v9, %v382_v11 }
 0x1e6   :  { %429 = vst [vmem:[#allocation10 + $0x10] sm:$0xff] %v423_v29  ;;  %v328_v14 = vmax.f32 %v322_v63, 0.0 }
 0x1e7   :  { %v380_v15 = vsel %vm379_vm11, %v489_v54, %v376_v10  ;;  %v384_v20 = vmul.f32 0.5, %v383_v16 }
 0x1e8   :  { %v404_v18 = vmul.f32 %v380_v15, %v332_v12  ;;  %v340_v19 = vadd.f32 1e-05, %v328_v14 }
 0x1e9   :  { %v385_v23 = vsub.f32 1.5, %v384_v20 }
 0x1ea   :  { %v414_v21 = vmul.f32 %v750_v25, %v404_v18  ;;  %492 = vrsqrt.f32 %v340_v19  ;;  %vm397_vm0 = vweird.f32 %v340_v19 }
 0x1eb   :  { %v386_v26 = vmul.f32 %v491_v9, %v385_v23 }
 0x1ec   :  { %v424_v24 = vadd.f32 %v757_v33, %v414_v21 }
 0x1ed   :  { %v390_v13 = vsel %vm389_vm14, %v491_v9, %v386_v26 }
 0x1ee   :  { %430 = vst [vmem:[#allocation10 + $0x18] sm:$0xff] %v424_v24  ;;  %v405_v30 = vmul.f32 %v390_v13, %v333_v35 }
 0x1f0   :  { %v493_v28 = vpop.eup %492  ;;  %v415_v32 = vmul.f32 %v750_v25, %v405_v30 }
 0x1f1   :  { %v392_v31 = vmul.f32 %v493_v28, %v340_v19  ;;  %vm398_vm15 = vweird.f32 %v493_v28 }
 0x1f2   :  { %v425_v17 = vadd.f32 %v757_v33, %v415_v32  ;;  %vm399_vm1 = vmor %vm397_vm0, %vm398_vm15 }
 0x1f3   :  { %v393_v34 = vmul.f32 %v493_v28, %v392_v31 }
 0x1f4   :  { %431 = vst [vmem:[#allocation10 + $0x20] sm:$0xff] %v425_v17 }
 0x1f5   :  { %v394_v36 = vmul.f32 0.5, %v393_v34 }
 0x1f7   :  { %v395_v37 = vsub.f32 1.5, %v394_v36 }
 0x1f9   :  { %v396_v38 = vmul.f32 %v493_v28, %v395_v37 }
 0x1fb   :  { %v400_v40 = vsel %vm399_vm1, %v493_v28, %v396_v38 }
 0x1fc   :  { %v406_v27 = vmul.f32 %v400_v40, %v334_v39 }
 0x1fe   :  { %v416_v41 = vmul.f32 %v750_v25, %v406_v27 }
 0x200   :  { %v426_v42 = vadd.f32 %v757_v33, %v416_v41 }
 0x202   :  { %432 = vst [vmem:[#allocation10 + $0x28] sm:$0xff] %v426_v42 }
 0x203   :  { %445 = dma.vmem_to_hbm [thread:$0]  %s438_s6, 768, %s440_s28, [#allocation4], %s626_s13, %s626_s13, %s627_s14  }
 0x204   :  { %620 = dma.done.wait [#allocation4], 768  }
 0x205   :  { %621 = vsyncadd [#allocation4], 4294966528 }
 0x206   :  { %450 = vsyncpa [#allocation3], 1 }
 0x207   :  { %451 = vsyncpa [#allocation6], 1 }
 0x208   :  { %452 = vsyncpa [#allocation9], 1 }
 0x209   :  { %453 = vsyncpa [#allocation4], 1 }

</bundles_post_ra>
